<compile_context>
chip_gen: v7x
topology: tpu7x:2x2x1
jax: 0.10.0
libtpu: 0.0.40
codegen_flags: <defaults>
</compile_context>

<pallas_src>
import functools

import jax
import jax.numpy as jnp
from jax.experimental import pallas as pl
from jax.experimental.pallas import tpu as pltpu


def _round_up(x: int, k: int) -> int:
    return ((x + k - 1) // k) * k


def _margin_loss_kernel(sim_ref, pos_ref, out_ref, *, n, m, margin, activation):
    """One (tile_n, tile_m) tile of the margin loss.

    sim_ref: (tile_n, tile_m) similarities tile (native dtype)
    pos_ref: (tile_n, 1)      positive similarity per row (native dtype)
    out_ref: (tile_n, 1) f32  per-row partial sums, resident across the choice axis
    """
    i = pl.program_id(0)
    j = pl.program_id(1)

    # Output block is the accumulator across the reduction (choice) axis.
    @pl.when(j == 0)
    def _init():
        out_ref[...] = jnp.zeros_like(out_ref)

    tn, tm = sim_ref.shape
    sim = sim_ref[...].astype(jnp.float32)
    pos = pos_ref[...].astype(jnp.float32)

    vals = activation(sim + jnp.float32(margin) - pos)  # (tile_n, tile_m)

    # Mask out padded rows / columns so the wrapper can divide by the true n*m.
    row = i * tn + jax.lax.broadcasted_iota(jnp.int32, (tn, tm), 0)
    col = j * tm + jax.lax.broadcasted_iota(jnp.int32, (tn, tm), 1)
    valid = (row < n) & (col < m)

    out_ref[...] += jnp.sum(jnp.where(valid, vals, 0.0), axis=-1, keepdims=True)


def margin_loss(similarities, true_indices, *, margin=1.0, exact_loss_value=False,
                activation=jax.nn.relu, tile_n=None, tile_m=None):
    """MarginLoss.forward: similarities (n, m) float, true_indices (n,) int."""
    n, m = similarities.shape
    assert n > 0 and m > 0, "empty similarity matrix"  # avoid divide-by-zero

    # Gather the positive similarity per row (O(n) glue; stays in plain JAX).
    pos = jnp.take_along_axis(
        similarities, true_indices.astype(jnp.int32)[:, None], axis=1)  # (n, 1)

    # (8, 128)-aligned tiles; modest caps keep double-buffered VMEM tiny.
    tn = _round_up(min(tile_n or 256, _round_up(n, 8)), 8)
    tm = _round_up(min(tile_m or 1024, _round_up(m, 128)), 128)
    n_pad = _round_up(n, tn)
    m_pad = _round_up(m, tm)

    sim_p = jnp.pad(similarities, ((0, n_pad - n), (0, m_pad - m)))
    pos_p = jnp.pad(pos, ((0, n_pad - n), (0, 0)))

    grid = (n_pad // tn, m_pad // tm)
    kernel = functools.partial(
        _margin_loss_kernel, n=n, m=m, margin=float(margin), activation=activation)

    itemsize = jnp.dtype(similarities.dtype).itemsize
    row_sums = pl.pallas_call(
        kernel,
        out_shape=jax.ShapeDtypeStruct((n_pad, 1), jnp.float32),
        grid_spec=pltpu.PrefetchScalarGridSpec(
            num_scalar_prefetch=0,
            grid=grid,
            in_specs=[
                pl.BlockSpec((tn, tm), lambda i, j: (i, j)),  # similarities tile
                pl.BlockSpec((tn, 1), lambda i, j: (i, 0)),   # pos_sim per row
            ],
            out_specs=pl.BlockSpec((tn, 1), lambda i, j: (i, 0)),
        ),
        compiler_params=pltpu.CompilerParams(
            dimension_semantics=("parallel", "arbitrary")),
        cost_estimate=pl.CostEstimate(
            flops=5 * n * m,
            transcendentals=0,
            bytes_accessed=sim_p.size * itemsize + pos_p.size * itemsize + n_pad * 4),
    )(sim_p, pos_p)

    loss = jnp.sum(row_sums) / jnp.float32(n * m)
    if exact_loss_value:
        loss = loss - activation(jnp.asarray(margin, dtype=jnp.float32)) / m
    return loss


def _reference_margin_loss(similarities, true_indices, *, margin=1.0,
                           exact_loss_value=False, activation=jax.nn.relu):
    """Pure-JAX reference mirroring the PyTorch semantics (for verification)."""
    pos = jnp.take_along_axis(similarities, true_indices[:, None], axis=1)
    loss = jnp.mean(activation(similarities + margin - pos))
    if exact_loss_value:
        loss = loss - activation(jnp.asarray(margin, jnp.float32)) / similarities.shape[1]
    return loss


if __name__ == "__main__":
    key = jax.random.PRNGKey(0)
    k1, k2 = jax.random.split(key)

    n, m = 20, 300  # small, deliberately not (8, 128)-aligned to exercise masking
    similarities = jax.random.normal(k1, (n, m), dtype=jnp.float32)
    true_indices = jax.random.randint(k2, (n,), 0, m, dtype=jnp.int32)

    # Hard-margin (ReLU), exact loss value, small tiles to exercise the 2-D grid.
    loss = jax.block_until_ready(
        margin_loss(similarities, true_indices, margin=1.0, exact_loss_value=True,
                    tile_n=8, tile_m=128))
    ref = _reference_margin_loss(similarities, true_indices, margin=1.0,
                                 exact_loss_value=True)
    assert jnp.allclose(loss, ref, atol=1e-5, rtol=1e-5), (loss, ref)

    # Soft-margin (softplus) variant, default (single-tile) grid.
    loss_sp = jax.block_until_ready(
        margin_loss(similarities, true_indices, margin=0.5,
                    activation=jax.nn.softplus))
    ref_sp = _reference_margin_loss(similarities, true_indices, margin=0.5,
                                    activation=jax.nn.softplus)
    assert jnp.allclose(loss_sp, ref_sp, atol=1e-5, rtol=1e-5), (loss_sp, ref_sp)

    print("KERNEL_OK")
</pallas_src>

<mosaic_0001>
module attributes {stable_mosaic.version = 11 : i64} {
  func.func @_margin_loss_kernel(%arg0: i32, %arg1: i32, %arg2: memref<8x128xf32, #tpu.memory_space<vmem>>, %arg3: memref<8x1xf32, #tpu.memory_space<vmem>>, %arg4: memref<8x1xf32, #tpu.memory_space<vmem>>) attributes {dimension_semantics = [#tpu.dimension_semantics<parallel>, #tpu.dimension_semantics<arbitrary>], iteration_bounds = array<i64: 3, 3>, scalar_prefetch = 0 : i64, scratch_operands = 0 : i64, tpu.core_type = #tpu.core_type<tc>, window_params = [{transform_indices = @transform_0, window_bounds = array<i64: 8, 128>}, {transform_indices = @transform_1, window_bounds = array<i64: 8, 1>}, {transform_indices = @transform_2, window_bounds = array<i64: 8, 1>}]} {
    %c0_i32 = arith.constant 0 : i32
    %0 = arith.cmpi eq, %arg1, %c0_i32 : i32
    %1 = arith.extui %0 : i1 to i32
    %c0_i32_0 = arith.constant 0 : i32
    %2 = arith.cmpi ne, %1, %c0_i32_0 : i32
    scf.if %2 {
      %cst_11 = arith.constant 0.000000e+00 : f32
      %31 = vector.broadcast %cst_11 : f32 to vector<8x1xf32>
      %c0_12 = arith.constant 0 : index
      %c0_13 = arith.constant 0 : index
      %32 = vector.load %arg4[%c0_12, %c0_13] : memref<8x1xf32, #tpu.memory_space<vmem>>, vector<8x1xf32>
      tpu.vector_store %arg4[%c0_12, %c0_13], %31 {strides = array<i32>} : memref<8x1xf32, #tpu.memory_space<vmem>>, vector<8x1xf32>,
    } else {
    }
    %c0 = arith.constant 0 : index
    %c0_1 = arith.constant 0 : index
    %3 = vector.load %arg2[%c0, %c0_1] : memref<8x128xf32, #tpu.memory_space<vmem>>, vector<8x128xf32>
    %c0_2 = arith.constant 0 : index
    %c0_3 = arith.constant 0 : index
    %4 = vector.load %arg3[%c0_2, %c0_3] : memref<8x1xf32, #tpu.memory_space<vmem>>, vector<8x1xf32>
    %cst = arith.constant 1.000000e+00 : f32
    %5 = vector.broadcast %cst : f32 to vector<8x128xf32>
    %6 = arith.addf %3, %5 : vector<8x128xf32>
    %7 = vector.broadcast %4 : vector<8x1xf32> to vector<8x128xf32>
    %8 = arith.subf %6, %7 : vector<8x128xf32>
    %cst_4 = arith.constant 0.000000e+00 : f32
    %9 = vector.broadcast %cst_4 : f32 to vector<8x128xf32>
    %10 = arith.maximumf %8, %9 : vector<8x128xf32>
    %c8_i32 = arith.constant 8 : i32
    %11 = arith.muli %arg0, %c8_i32 : i32
    %12 = tpu.iota {dimensions = array<i32: 0>} : vector<8x128xi32>
    %13 = vector.broadcast %11 : i32 to vector<8x128xi32>
    %14 = arith.addi %13, %12 : vector<8x128xi32>
    %c128_i32 = arith.constant 128 : i32
    %15 = arith.muli %arg1, %c128_i32 : i32
    %16 = tpu.iota {dimensions = array<i32: 1>} : vector<8x128xi32>
    %17 = vector.broadcast %15 : i32 to vector<8x128xi32>
    %18 = arith.addi %17, %16 : vector<8x128xi32>
    %c20_i32 = arith.constant 20 : i32
    %19 = vector.broadcast %c20_i32 : i32 to vector<8x128xi32>
    %20 = arith.cmpi slt, %14, %19 : vector<8x128xi32>
    %c300_i32 = arith.constant 300 : i32
    %21 = vector.broadcast %c300_i32 : i32 to vector<8x128xi32>
    %22 = arith.cmpi slt, %18, %21 : vector<8x128xi32>
    %23 = arith.andi %20, %22 : vector<8x128xi1>
    %c0_5 = arith.constant 0 : index
    %c0_6 = arith.constant 0 : index
    %24 = vector.load %arg4[%c0_5, %c0_6] : memref<8x1xf32, #tpu.memory_space<vmem>>, vector<8x1xf32>
    %cst_7 = arith.constant 0.000000e+00 : f32
    %25 = vector.broadcast %cst_7 : f32 to vector<8x128xf32>
    %26 = arith.select %23, %10, %25 : vector<8x128xi1>, vector<8x128xf32>
    %cst_8 = arith.constant dense<0.000000e+00> : vector<8xf32>
    %27 = vector.multi_reduction <add>, %26, %cst_8 [1] : vector<8x128xf32> to vector<8xf32>
    %28 = vector.shape_cast %27 : vector<8xf32> to vector<8x1xf32>
    %29 = arith.addf %24, %28 : vector<8x1xf32>
    %c0_9 = arith.constant 0 : index
    %c0_10 = arith.constant 0 : index
    %30 = vector.load %arg4[%c0_9, %c0_10] : memref<8x1xf32, #tpu.memory_space<vmem>>, vector<8x1xf32>
    tpu.vector_store %arg4[%c0_9, %c0_10], %29 {strides = array<i32>} : memref<8x1xf32, #tpu.memory_space<vmem>>, vector<8x1xf32>,
    return
  }
  func.func @transform_0(%arg0: i32, %arg1: i32) -> (i32, i32) {
    %c0_i32 = arith.constant 0 : i32
    return %arg0, %arg1 : i32, i32
  }
  func.func @transform_1(%arg0: i32, %arg1: i32) -> (i32, i32) {
    %c0_i32 = arith.constant 0 : i32
    %c0_i32_0 = arith.constant 0 : i32
    return %arg0, %c0_i32 : i32, i32
  }
  func.func @transform_2(%arg0: i32, %arg1: i32) -> (i32, i32) {
    %c0_i32 = arith.constant 0 : i32
    %c0_i32_0 = arith.constant 0 : i32
    return %arg0, %c0_i32 : i32, i32
  }
}

</mosaic_0001>

<bundles_post_ra>
// kernel: tpu_custom_call.1
= control target key start
LH: loop header
LB: loop body
LE: loop exit
PB: predicated region body
PF: predicated region fallthrough
CT: control target
= control target key end

     0   :  { %7 = vsyncpa [#allocation3], 0  ;;  %s685_s0 = inlined_call_operand.hbm [shape: f32[24,384], index: 0, kind: input, shape index: {}]   ;;  %s686_s1 = inlined_call_operand.vmem [shape: f32[24,1], index: 1, kind: input, shape index: {}]   ;;  %s687_s2 = inlined_call_operand.vmem [shape: f32[24,1], index: 2, kind: output, shape index: {}]  }
   0x1   :  { %9 = vsyncpa [#allocation3 + $0x1], 0  ;;  %s524_s9 = smov 0   ;;  %s526_s10 = smov 0  }
   0x2   :  { %s528_s11 = smov 0   ;;  %s530_s12 = smov 0  }
   0x3   :  { %s532_s13 = smov 0   ;;  %s534_s14 = smov 0  }
   0x4   :  { %s536_s15 = smov 0   ;;  %s538_s16 = smov 0  }
   0x5 LB: > { %s318_s17 = sadd.s32 4294967295, %s504_s16   ;;  %s24_s18 = sadd.s32 1, %s496_s14  ;;  %s504_s16 = sphi %s538_s16, %s15_s16   ;;  %s500_s15 = sphi %s536_s15, %s699_s15   ;;  %s496_s14 = sphi %s534_s14, %s698_s14   ;;  %s492_s13 = sphi %s532_s13, %s697_s13   ;;  %s488_s12 = sphi %s530_s12, %s696_s12   ;;  %s484_s11 = sphi %s528_s11, %s695_s11   ;;  %s480_s10 = sphi %s526_s10, %s694_s10   ;;  %s476_s9 = sphi %s524_s9, %s693_s9  }
   0x6   : > { %p25_p0 = scmp.ge.s32.totalorder %s24_s18, 3  ;;  %s27_s19 = sadd.s32 1, %s500_s15 }
   0x7   : > { %s36_s20 = sadd.s32 1, %s484_s11  ;;  %p43_p1 = scmp.ne.s32.totalorder %s484_s11, %s480_s10 }
   0x8   : > { %s701_s18 = smov (%p25_p0, %s24_s18), 0  ;;  %s703_s19 = smov (!%p25_p0, %s27_s19), %s500_s15 }
   0x9   : > { %s32_s21 = ssub.s32 %s496_s14, %s701_s18  ;;  %p44_p2 = scmp.eq.s32.totalorder %s504_s16, 0 }
   0xa   : > { %p29_p3 = scmp.ge.s32.totalorder %s703_s19, 3  ;;  %p49_p4 = scmp.ne.s32.totalorder %s480_s10, %s476_s9 }
   0xb   : > { %p575_p5 = por %p44_p2, %p43_p1  ;;  %p50_p6 = scmp.eq.s32.totalorder %s318_s17, 0 }
   0xc   : > { %s705_s19 = smov (%p29_p3, %s703_s19), 0  ;;  %p340_p8 = scmp.lt.s32.totalorder %s504_s16, 9 }
   0xd   : > { %p581_p7 = por %p50_p6, %p49_p4  ;;  %s31_s24 = ssub.s32 %s500_s15, %s705_s19 }
   0xe   : > { %s33_s25 = sor.u32 %s32_s21, %s31_s24  ;;  %s125_s26 = sand.u32 1, %s484_s11  }
   0xf   : > { %p34_p9 = scmp.eq.s32.totalorder %s33_s25, 0  ;;  %s322_s27 = sshll.u32 %s125_s26, 3 }
  0x10   : > { %s333_s28 = smul.u32 3, %s500_s15  ;;  %s129_s4 = scalar_lea.vmem [#allocation2], %s322_s27 }
  0x11   : > { %s591_s29 = scalar_select %p34_p9, %s484_s11, %s36_s20  }
  0x12   : > { %s134_s30 = sadd.s32 %s496_s14, %s333_s28  ;;  %s138_s5 = sshll.u32 %s129_s4, 4  ;;  %s599_s5 = int_to_ptr.vmem [resolvable:$true] %s138_s5 }
  0x13   : > { %s323_s3 = sshll.u32 %s134_s30, 7  ;;  %p605_p10 = pnand %p340_p8, %p575_p5 }
  0x14   : > { %s597_s8 = scalar_lea.hbm %s685_s0, %s323_s3  ;;  %s126_s17 = scalar_lea.sflag [#allocation3], %s125_s26 }
  0x15   : > { %s408_s20 = scalar_lea.hbm %s597_s8, 128  ;;  %p410_p0 = pneg %p605_p10 }
  0x16   : > { %p409_p13 = scmp.ne.s32.totalorder %s597_s8, %s408_s20  ;;  %s413_s24 = scalar_lea.hbm %s685_s0, 1152 }
  0x17   : > { %p414_p3 = scmp.lt.u32.totalorder %s597_s8, %s685_s0  ;;  %p415_p4 = scmp.lt.u32.totalorder %s413_s24, %s408_s20 }
  0x18   : > { %p411_p1 = pnand %p410_p0, %p409_p13  ;;  %p417_p6 = scmp.lt.u32.totalorder %s408_s20, %s597_s8 }
  0x19   : > { %p416_p5 = por %p415_p4, %p414_p3 }
  0x1a   : > { %p412_p2 = pneg %p411_p1 }
  0x1b   : > { %p418_p8 = por %p417_p6, %p416_p5 }
  0x1d   : > { %p419_p9 = pnand %p418_p8, %p412_p2 }
  0x1f   : > { %422 = shalt.err (!%p419_p9)
}
  0x20   : > { %s423_s26 = scalar_lea.vmem %s599_s5, 128  ;;  %s506_s28 = smov [#allocation2]  }
  0x21   : > { %p424_p13 = scmp.ne.s32.totalorder %s599_s5, %s423_s26  ;;  %s428_s30 = sshll.u32 %s506_s28, 4  ;;  %s429_s30 = int_to_ptr.vmem [resolvable:$false] %s428_s30 }
  0x22   : > { %s430_s3 = scalar_lea.vmem %s429_s30, 256  ;;  %p431_p12 = scmp.lt.s32.totalorder %s599_s5, %s429_s30 }
  0x23   : > { %p426_p1 = pnand %p424_p13, %p410_p0  ;;  %p432_p3 = scmp.lt.s32.totalorder %s430_s3, %s423_s26 }
  0x25   : > { %p427_p11 = pneg %p426_p1  ;;  %p433_p4 = por %p432_p3, %p431_p12 }
  0x27   : > { %p434_p5 = pnand %p433_p4, %p427_p11 }
  0x29   : > { %437 = shalt.err (!%p434_p5)
}
  0x2a   : > { %339 = dma.hbm_to_vmem [thread:$0]  (!%p605_p10), %s597_s8, 128, %s599_s5, %s126_s17  }
  0x2b   : > { %p691_p2 = scmp.lt.s32.totalorder %s504_s16, 10  ;;  %p692_p6 = scmp.ge.s32.totalorder %s504_s16, 1 }
  0x2d   : > { %p151_p0 = pnand %p692_p6, %p691_p2 }
  0x2e   : > { %s156_s4 = sand.u32 (!%p151_p0), 1, %s480_s10  }
  0x2f   : > { %154 = sbr.rel (%p151_p0) target bundleno = 345 (0x159), region = 28  ;;  %s325_s6 = sshll.u32 (!%p151_p0), %s156_s4, 3 }
  0x30   : > { %s157_s7 = scalar_lea.sflag (!%p151_p0), [#allocation3], %s156_s4  ;;  %s160_s20 = scalar_lea.vmem (!%p151_p0), [#allocation2], %s325_s6 }
  0x36   : > { %471 = dma.done.wait (%p581_p7), %s157_s7, 128  }
  0x37   : > { %473 = vsyncadd (%p581_p7), %s157_s7, 4294967168  ;;  %p184_p11 = scmp.lt.s32.totalorder %s492_s13, 2  ;;  %p328_p10 = scmp.ne.s32.totalorder %s488_s12, 0 }
  0x38   : > { %vm196_vm0 = vcmask (!%p328_p10), 7168   ;;  %v507_v0 = vmov (!%p328_p10), 0.0  }
  0x39   : > { %s185_s9 = scalar_select %p184_p11, %s492_s13, 2 }
  0x3a   : > { %195 = sbr.rel (%p328_p10) target bundleno = 65 (0x41), region = 36 }
  0x3b   : > { %s326_s5 = sshll.u32 %s185_s9, 3 }
  0x3c   : > { %s187_s21 = scalar_lea.vmem %s686_s1, %s326_s5  ;;  %s653_s25 = scalar_lea.vmem %s687_s2, %s326_s5 }
  0x3d   : > { %197 = vst.msk [vmem:[%s653_s25] sm:$0xff] (!%p328_p10), %vm196_vm0, %v507_v0 }
  0x41 PF: > { %v199_v1 = vld [vmem:[%s187_s21] sm:$0xff]  ;;  %v508_v2 = vmov 0   ;;  %v209_v3 = vlaneseq  ;;  %s329_s23 = sshll.u32 %s492_s13, 3  ;;  %s330_s27 = sshll.u32 %s488_s12, 7  ;;  %vm226_vm4 = vcmask 7168  }
  0x42   : > { %407 = vset.pattern.permute.xlu0 %v508_v2  ;;  %v211_v6 = vstv %s329_s23  ;;  %v216_v7 = vstv %s330_s27  ;;  %v198_v8 = vld [vmem:[%s160_s20] sm:$0xff] }
  0x43   : > { %203 = vperm.xlu0 %407, %v199_v1   ;;  %v210_v4 = vshrl.u32 %v209_v3, 7  ;;  %v215_v5 = vand.u32 127, %v209_v3  ;;  %v200_v11 = vadd.f32 1.0, %v198_v8 }
  0x44   : > { %v221_v16 = vld [vmem:[%s653_s25] sm:$0xff] }
  0x45   : > { %v212_v9 = vadd.s32 %v211_v6, %v210_v4  ;;  %v217_v10 = vadd.s32 %v216_v7, %v215_v5 }
  0x47   : > { %vm218_vm1 = vcmp.lt.s32.totalorder %v212_v9, 20  ;;  %vm219_vm2 = vcmp.lt.s32.totalorder %v217_v10, 300 }
  0x48   : > { %vm220_vm3 = vmand %vm218_vm1, %vm219_vm2 }
  0xc2   : > { %v204_v12 = vpop.permute.xlu0 %203 }
  0xc3   : > { %v206_v13 = vsub.f32 %v200_v11, %v204_v12 }
  0xc5   : > { %v207_v14 = vmax.f32 %v206_v13, 0.0 }
  0xc7   : > { %v222_v15 = vsel %vm220_vm3, %v207_v14, 0.0 }
  0xc8   : > { %223 = vadd.xlane.f32.xlu0 %v222_v15 }
 0x155   : > { %v224_v17 = vpop.xlane.xlu0 %223 }
 0x156   : > { %v225_v18 = vadd.f32 %v224_v17, %v221_v16 }
 0x158   : > { %227 = vst.msk [vmem:[%s653_s25] sm:$0xff] %vm226_vm4, %v225_v18 }
 0x159 PF: > { %s15_s16 = sadd.s32 1, %s504_s16   ;;  %s693_s9 = smov %s480_s10 }
 0x15a   : > { %p12_p7 = scmp.ge.s32.totalorder %s15_s16, 11   ;;  %s694_s10 = smov %s484_s11 }
 0x15b   : > { %s695_s11 = smov %s591_s29  ;;  %s696_s12 = smov %s496_s14 }
 0x15c   : > { %s697_s13 = smov %s500_s15  ;;  %s698_s14 = smov %s701_s18 }
 0x15d   : > { %s699_s15 = smov %s705_s19  ;;  %14 = sbr.rel (!%p12_p7) target bundleno = 5 (0x5), region = 75 }
 0x164   :  { %247 = vsyncpa [#allocation3], 1 }
 0x165   :  { %249 = vsyncpa [#allocation3 + $0x1], 1 }

</bundles_post_ra>
